<compile_context>
chip_gen: v7x
topology: tpu7x:2x2x1
jax: 0.10.0
libtpu: 0.0.40
codegen_flags: <defaults>
</compile_context>

<pallas_src>
import jax
import jax.numpy as jnp
from jax.experimental import pallas as pl
from jax.experimental.pallas import tpu as pltpu


# ------------------------------------------------------------------ kernel ---

def _make_actor_kernel(n_sub, sub, compute_dtype, act_dtype):
    """Kernel over one (TB = n_sub*sub)-row batch tile, sub-blocked by `sub`."""

    def actor_kernel(x_ref, w1_ref, b1_ref, w2_ref, b2_ref, w3_ref, b3_ref,
                     mean_ref):
        # Weights / biases are VMEM-resident (constant index_map); load once
        # per grid step and reuse across the (unrolled) sub-block loop.
        w1 = w1_ref[...]
        w2 = w2_ref[...]
        w3 = w3_ref[...]
        b1 = b1_ref[...]                      # f32 [1, 128]
        b2 = b2_ref[...]                      # f32 [1, 256]
        b3 = b3_ref[0, 0]                     # f32 scalar from SMEM

        # Statically unrolled sub-block loop: bounds h1/h2 to [sub, 128/256]
        # and keeps all output stores on static 128-aligned lane slices.
        for j in range(n_sub):
            lo = j * sub
            hi = lo + sub
            x = x_ref[lo:hi, :].astype(compute_dtype)           # VPU cast, no HBM copy
            a1 = jnp.dot(x, w1, preferred_element_type=jnp.float32) + b1
            h1 = jnp.tanh(a1.astype(act_dtype)).astype(compute_dtype)   # [sub, 128]
            a2 = jnp.dot(h1, w2, preferred_element_type=jnp.float32) + b2
            h2 = jnp.tanh(a2.astype(act_dtype)).astype(compute_dtype)   # [sub, 256]
            # Layer 3 (out_features == 1): contract w3 [1,256] against h2
            # [sub,256] on the feature axis -> [1, sub] row.
            row = jax.lax.dot_general(
                w3, h2,
                dimension_numbers=(((1,), (1,)), ((), ())),
                preferred_element_type=jnp.float32)             # [1, sub]
            mean_ref[:, lo:hi] = row + b3

    return actor_kernel


# ----------------------------------------------------------------- wrapper ---

def _round_up(x, m):
    return ((x + m - 1) // m) * m


def _choose_tile(batch, block_b):
    """Batch-tile rows per grid step."""
    if batch <= 256:
        # Tiny batch: one exact-size tile (block == full array, any B legal).
        return batch
    tb = _round_up(max(block_b, 128), 128)
    # v7x megacore: cap TB at ceil(B/2) (rounded to 128) so the "parallel"
    # batch axis always has >= 2 tiles and both TensorCores get work.
    tb = min(tb, _round_up(pl.cdiv(batch, 2), 128))
    return max(tb, 128)


def _choose_sub(tb, sub_block):
    """Largest sub-block of {sub_block, 256, 128} dividing TB (else TB)."""
    for s in (sub_block, 256, 128):
        if s <= tb and tb % s == 0:
            return s
    return tb


def prepare_actor_params(params, *, use_bf16_matmul=True):
    """One-time weight prep: cast matmul weights to bf16 (biases stay f32).

    Do this ONCE outside the per-call path so no per-invocation HBM copy of
    the weights is materialized.
    """
    w1, b1, w2, b2, w3, b3, log_std = params
    if use_bf16_matmul:
        w1 = w1.astype(jnp.bfloat16)
        w2 = w2.astype(jnp.bfloat16)
        w3 = w3.astype(jnp.bfloat16)
    return (w1, b1, w2, b2, w3, b3, log_std)


def actor_forward(state, params, *, block_b=1024, sub_block=512,
                  activation_dtype=None):
    """Returns (mean, std) of the Normal produced by Actor.forward.

    block_b:   target batch-tile rows per grid step (rounded to 128).  Large
               tiles amortize per-grid-step overhead; per-tile VMEM stays in
               the low-MiB range so it fits v5e/v6e/v7x alike.
    sub_block: in-kernel sub-block rows (bounds h1/h2 live ranges).
    activation_dtype: dtype for tanh / activations.  Defaults to the weight
               dtype (bf16 weights -> bf16 tanh: v6e/v7x fast path).  Pass
               jnp.float32 on v5e (no bf16 VPU/EUP) with bf16 weights.
    """
    B, D = state.shape
    w1, b1, w2, b2, w3, b3, log_std = params

    compute_dtype = w1.dtype
    act_dtype = compute_dtype if activation_dtype is None else activation_dtype

    TB = _choose_tile(B, block_b)
    SUB = _choose_sub(TB, sub_block)
    n_sub = TB // SUB
    n_blocks = pl.cdiv(B, TB)        # partial edge block: tail writes discarded

    # VMEM budget: double-buffered state/out tiles + worst-case f32 h1/h2 +
    # double-buffered weights.  Clamp to 64 MiB (v7x physical ceiling).
    w_isize = jnp.dtype(compute_dtype).itemsize
    est = (2 * TB * D * state.dtype.itemsize          # state tiles (x2 buffers)
           + 2 * 8 * TB * 4                           # (1, TB) f32 out, sublane-padded
           + TB * (128 + 256) * 4                     # h1/h2 f32 upper bound
           + 2 * (D * 128 + 128 * 256 + 256) * w_isize
           + 4 * (128 + 256 + 1) * 4)                 # biases
    vmem_limit = int(min(max(est + (8 << 20), 32 << 20), 64 << 20))

    def full_spec(arr):
        nd = arr.ndim
        return pl.BlockSpec(arr.shape, lambda i, _nd=nd: (0,) * _nd)

    kernel = _make_actor_kernel(n_sub, SUB, compute_dtype, act_dtype)

    mean_row = pl.pallas_call(
        kernel,
        out_shape=jax.ShapeDtypeStruct((1, B), jnp.float32),
        grid=(n_blocks,),
        in_specs=[
            pl.BlockSpec((TB, D), lambda i: (i, 0)),              # state tile
            full_spec(w1), full_spec(b1),                         # resident weights
            full_spec(w2), full_spec(b2),
            full_spec(w3),
            pl.BlockSpec(memory_space=pltpu.MemorySpace.SMEM),    # b3 scalar
        ],
        out_specs=pl.BlockSpec((1, TB), lambda i: (0, i)),        # mean row
        compiler_params=pltpu.CompilerParams(
            dimension_semantics=("parallel",),                    # v7x: 2 TCs share batch
            vmem_limit_bytes=vmem_limit),
    )(state, w1, b1, w2, b2, w3, b3)

    mean = mean_row[0, :].reshape(B, 1)
    # std is a single scalar op -> wrapper, not the kernel.
    std = jnp.clip(jnp.exp(log_std), 0.001, 1.0)
    return mean, jnp.broadcast_to(std, (B, 1))


# -------------------------------------------------------- init / reference ---

def init_actor_params(key, num_dimensions):
    """Deterministic init mirroring nn.Linear's default U(-1/sqrt(fan_in), 1/sqrt(fan_in))."""
    ks = jax.random.split(key, 6)

    def linear(kw, kb, fan_in, fan_out, w_shape):
        bound = 1.0 / jnp.sqrt(fan_in)
        w = jax.random.uniform(kw, w_shape, jnp.float32, -bound, bound)
        b = jax.random.uniform(kb, (1, fan_out), jnp.float32, -bound, bound)
        return w, b

    w1, b1 = linear(ks[0], ks[1], num_dimensions, 128, (num_dimensions, 128))  # [in, out]
    w2, b2 = linear(ks[2], ks[3], 128, 256, (128, 256))                        # [in, out]
    w3, b3 = linear(ks[4], ks[5], 256, 1, (1, 256))                            # [out, in]
    log_std = jnp.full((1,), 0.1, dtype=jnp.float32)   # nn.Parameter(torch.full((1,), 0.1))
    return (w1, b1, w2, b2, w3, b3, log_std)


def actor_forward_ref(state, params):
    w1, b1, w2, b2, w3, b3, log_std = params
    w1, w2, w3 = (w.astype(jnp.float32) for w in (w1, w2, w3))
    h1 = jnp.tanh(state @ w1 + b1)
    h2 = jnp.tanh(h1 @ w2 + b2)
    mean = h2 @ w3.T + b3
    std = jnp.clip(jnp.exp(log_std), 0.001, 1.0)
    return mean, jnp.broadcast_to(std, mean.shape)


# -------------------------------------------------------------------- main ---

if __name__ == "__main__":
    key = jax.random.PRNGKey(0)
    k_param, k_s1, k_s2, k_s3 = jax.random.split(key, 4)

    num_dimensions = 32
    params = init_actor_params(k_param, num_dimensions)

    # 1) Tiny batch (single exact-size tile), pure f32.
    batch = 8
    state = jax.random.normal(k_s1, (batch, num_dimensions), dtype=jnp.float32)
    mean, std = actor_forward(state, params)
    jax.block_until_ready((mean, std))
    mean_ref, std_ref = actor_forward_ref(state, params)
    assert mean.shape == (batch, 1) and std.shape == (batch, 1)
    assert jnp.allclose(mean, mean_ref, atol=1e-4, rtol=1e-4)
    assert jnp.allclose(std, std_ref, atol=1e-6, rtol=1e-6)

    # 2) Batch that doesn't divide the tile: multi-tile grid + partial edge
    #    block (no wrapper padding; tail writes discarded), f32.
    batch2 = 300
    state2 = jax.random.normal(k_s2, (batch2, num_dimensions), dtype=jnp.float32)
    mean2, std2 = actor_forward(state2, params, block_b=128)
    jax.block_until_ready((mean2, std2))
    mean2_ref, std2_ref = actor_forward_ref(state2, params)
    assert mean2.shape == (batch2, 1) and std2.shape == (batch2, 1)
    assert jnp.allclose(mean2, mean2_ref, atol=1e-4, rtol=1e-4)
    assert jnp.allclose(std2, std2_ref, atol=1e-6, rtol=1e-6)

    # 3) Default big-tile path (TB=1024, inner 512-row sub-blocks) with the
    #    bf16 fast path (bf16 MXU operands + bf16 tanh; f32 accumulation).
    #    Weights pre-cast once (no per-call .astype copies).
    bf16_params = prepare_actor_params(params, use_bf16_matmul=True)
    batch3 = 2100
    state3 = jax.random.normal(k_s3, (batch3, num_dimensions), dtype=jnp.float32)
    mean3, std3 = actor_forward(state3, bf16_params)
    jax.block_until_ready((mean3, std3))
    mean3_ref, std3_ref = actor_forward_ref(state3, params)
    assert mean3.shape == (batch3, 1)
    assert jnp.allclose(mean3, mean3_ref, atol=5e-2, rtol=5e-2)
    assert jnp.allclose(std3, std3_ref, atol=1e-6, rtol=1e-6)

    # 3b) v5e-style variant: bf16 MXU operands but f32 tanh/activations.
    mean3b, _ = actor_forward(state3, bf16_params, activation_dtype=jnp.float32)
    jax.block_until_ready(mean3b)
    assert jnp.allclose(mean3b, mean3_ref, atol=5e-2, rtol=5e-2)

    # TODO(synk): torch.distributions.Normal itself (sampling / log_prob) is
    # left to the caller; the kernel returns the distribution parameters
    # (mean, std).
    print("KERNEL_OK")
</pallas_src>

<mosaic_0001>
module attributes {stable_mosaic.version = 11 : i64} {
  func.func @actor_kernel(%arg0: i32, %arg1: memref<8x32xf32, #tpu.memory_space<vmem>>, %arg2: memref<32x128xf32, #tpu.memory_space<vmem>>, %arg3: memref<1x128xf32, #tpu.memory_space<vmem>>, %arg4: memref<128x256xf32, #tpu.memory_space<vmem>>, %arg5: memref<1x256xf32, #tpu.memory_space<vmem>>, %arg6: memref<1x256xf32, #tpu.memory_space<vmem>>, %arg7: memref<1x1xf32, #tpu.memory_space<smem>>, %arg8: memref<1x8xf32, #tpu.memory_space<vmem>>) attributes {dimension_semantics = [#tpu.dimension_semantics<parallel>], iteration_bounds = array<i64: 1>, scalar_prefetch = 0 : i64, scratch_operands = 0 : i64, tpu.core_type = #tpu.core_type<tc>, window_params = [{transform_indices = @transform_0, window_bounds = array<i64: 8, 32>}, {pipeline_mode = #tpu.pipeline_mode<synchronous>, transform_indices = @transform_1, window_bounds = array<i64: 32, 128>}, {pipeline_mode = #tpu.pipeline_mode<synchronous>, transform_indices = @transform_2, window_bounds = array<i64: 1, 128>}, {pipeline_mode = #tpu.pipeline_mode<synchronous>, transform_indices = @transform_3, window_bounds = array<i64: 128, 256>}, {pipeline_mode = #tpu.pipeline_mode<synchronous>, transform_indices = @transform_4, window_bounds = array<i64: 1, 256>}, {pipeline_mode = #tpu.pipeline_mode<synchronous>, transform_indices = @transform_5, window_bounds = array<i64: 1, 256>}, {transform_indices = @transform_6, window_bounds = array<i64: 1, 1>}, {transform_indices = @transform_7, window_bounds = array<i64: 1, 8>}]} {
    %c0 = arith.constant 0 : index
    %c0_0 = arith.constant 0 : index
    %0 = vector.load %arg2[%c0, %c0_0] : memref<32x128xf32, #tpu.memory_space<vmem>>, vector<32x128xf32>
    %c0_1 = arith.constant 0 : index
    %c0_2 = arith.constant 0 : index
    %1 = vector.load %arg4[%c0_1, %c0_2] : memref<128x256xf32, #tpu.memory_space<vmem>>, vector<128x256xf32>
    %c0_3 = arith.constant 0 : index
    %c0_4 = arith.constant 0 : index
    %2 = vector.load %arg6[%c0_3, %c0_4] : memref<1x256xf32, #tpu.memory_space<vmem>>, vector<1x256xf32>
    %c0_5 = arith.constant 0 : index
    %c0_6 = arith.constant 0 : index
    %3 = vector.load %arg3[%c0_5, %c0_6] : memref<1x128xf32, #tpu.memory_space<vmem>>, vector<1x128xf32>
    %c0_7 = arith.constant 0 : index
    %c0_8 = arith.constant 0 : index
    %4 = vector.load %arg5[%c0_7, %c0_8] : memref<1x256xf32, #tpu.memory_space<vmem>>, vector<1x256xf32>
    %c0_9 = arith.constant 0 : index
    %c0_10 = arith.constant 0 : index
    %5 = memref.load %arg7[%c0_9, %c0_10] : memref<1x1xf32, #tpu.memory_space<smem>>
    %c0_11 = arith.constant 0 : index
    %c0_12 = arith.constant 0 : index
    %6 = vector.load %arg1[%c0_11, %c0_12] : memref<8x32xf32, #tpu.memory_space<vmem>>, vector<8x32xf32>
    %cst = arith.constant dense<0.000000e+00> : vector<8x128xf32>
    %7 = tpu.matmul %6, %0, %cst {dimension_numbers = #tpu.dot_dimension_numbers<[1], [0], [0], [1], [0, 0, 1, 1], [], []>} : vector<8x32xf32>, vector<32x128xf32>, vector<8x128xf32> -> vector<8x128xf32>
    %8 = vector.broadcast %3 : vector<1x128xf32> to vector<8x128xf32>
    %9 = arith.addf %7, %8 : vector<8x128xf32>
    %10 = math.tanh %9 : vector<8x128xf32>
    %cst_13 = arith.constant dense<0.000000e+00> : vector<8x256xf32>
    %11 = tpu.matmul %10, %1, %cst_13 {dimension_numbers = #tpu.dot_dimension_numbers<[1], [0], [0], [1], [0, 0, 1, 1], [], []>} : vector<8x128xf32>, vector<128x256xf32>, vector<8x256xf32> -> vector<8x256xf32>
    %12 = vector.broadcast %4 : vector<1x256xf32> to vector<8x256xf32>
    %13 = arith.addf %11, %12 : vector<8x256xf32>
    %14 = math.tanh %13 : vector<8x256xf32>
    %cst_14 = arith.constant dense<0.000000e+00> : vector<1x8xf32>
    %15 = tpu.matmul %2, %14, %cst_14 {dimension_numbers = #tpu.dot_dimension_numbers<[1], [1], [0], [0], [0, 0, 1, 0], [], []>} : vector<1x256xf32>, vector<8x256xf32>, vector<1x8xf32> -> vector<1x8xf32>
    %16 = vector.broadcast %5 : f32 to vector<1x8xf32>
    %17 = arith.addf %15, %16 : vector<1x8xf32>
    %c0_15 = arith.constant 0 : index
    %c0_16 = arith.constant 0 : index
    %18 = vector.load %arg8[%c0_15, %c0_16] : memref<1x8xf32, #tpu.memory_space<vmem>>, vector<1x8xf32>
    tpu.vector_store %arg8[%c0_15, %c0_16], %17 {strides = array<i32>} : memref<1x8xf32, #tpu.memory_space<vmem>>, vector<1x8xf32>,
    return
  }
  func.func @transform_0(%arg0: i32) -> (i32, i32) {
    %c0_i32 = arith.constant 0 : i32
    %c0_i32_0 = arith.constant 0 : i32
    return %arg0, %c0_i32 : i32, i32
  }
  func.func @transform_1(%arg0: i32) -> (i32, i32) {
    %c0_i32 = arith.constant 0 : i32
    %c0_i32_0 = arith.constant 0 : i32
    %c0_i32_1 = arith.constant 0 : i32
    return %c0_i32, %c0_i32_0 : i32, i32
  }
  func.func @transform_2(%arg0: i32) -> (i32, i32) {
    %c0_i32 = arith.constant 0 : i32
    %c0_i32_0 = arith.constant 0 : i32
    %c0_i32_1 = arith.constant 0 : i32
    return %c0_i32, %c0_i32_0 : i32, i32
  }
  func.func @transform_3(%arg0: i32) -> (i32, i32) {
    %c0_i32 = arith.constant 0 : i32
    %c0_i32_0 = arith.constant 0 : i32
    %c0_i32_1 = arith.constant 0 : i32
    return %c0_i32, %c0_i32_0 : i32, i32
  }
  func.func @transform_4(%arg0: i32) -> (i32, i32) {
    %c0_i32 = arith.constant 0 : i32
    %c0_i32_0 = arith.constant 0 : i32
    %c0_i32_1 = arith.constant 0 : i32
    return %c0_i32, %c0_i32_0 : i32, i32
  }
  func.func @transform_5(%arg0: i32) -> (i32, i32) {
    %c0_i32 = arith.constant 0 : i32
    %c0_i32_0 = arith.constant 0 : i32
    %c0_i32_1 = arith.constant 0 : i32
    return %c0_i32, %c0_i32_0 : i32, i32
  }
  func.func @transform_6(%arg0: i32) -> (i32, i32) {
    %c0_i32 = arith.constant 0 : i32
    %c0_i32_0 = arith.constant 0 : i32
    %c0_i32_1 = arith.constant 0 : i32
    return %c0_i32, %c0_i32_0 : i32, i32
  }
  func.func @transform_7(%arg0: i32) -> (i32, i32) {
    %c0_i32 = arith.constant 0 : i32
    %c0_i32_0 = arith.constant 0 : i32
    return %c0_i32, %arg0 : i32, i32
  }
}

</mosaic_0001>

<bundles_post_ra>
// kernel: tpu_custom_call.1
= control target key start
LH: loop header
LB: loop body
LE: loop exit
PB: predicated region body
PF: predicated region fallthrough
CT: control target
= control target key end

     0   :  { %13 = vsyncpa [#allocation4], 0  ;;  %s651_s0 = inlined_call_operand.hbm [shape: f32[8,32], index: 0, kind: input, shape index: {}]   ;;  %s652_s1 = inlined_call_operand.hbm [shape: f32[32,128], index: 1, kind: input, shape index: {}]   ;;  %s653_s2 = inlined_call_operand.vmem [shape: f32[1,128], index: 2, kind: input, shape index: {}]   ;;  %s654_s3 = inlined_call_operand.hbm [shape: f32[128,256], index: 3, kind: input, shape index: {}]   ;;  %s655_s4 = inlined_call_operand.vmem [shape: f32[1,256], index: 4, kind: input, shape index: {}]   ;;  %s656_s5 = inlined_call_operand.vmem [shape: f32[1,256], index: 5, kind: input, shape index: {}]   ;;  %s657_s6 = inlined_call_operand.<no memory space> [shape: f32[1,1], index: 6, kind: input, shape index: {}]   ;;  %s658_s7 = inlined_call_operand.hbm [shape: f32[1,8], index: 7, kind: output, shape index: {}]  }
   0x1   :  { %14 = vsyncpa [#allocation7], 0 }
   0x2   :  { %15 = vsyncpa [#allocation5], 0  ;;  %s540_s24 = smov [#allocation6]   ;;  %s446_s28 = scalar_lea.hbm %s652_s1, 512 }
   0x3   :  { %s31_s25 = sshll.u32 %s540_s24, 4  ;;  %p447_p0 = scmp.ne.s32.totalorder %s652_s1, %s446_s28  ;;  %s32_s25 = int_to_ptr.vmem [resolvable:$true] %s31_s25 }
   0x4   :  { %p450_p1 = scmp.lt.u32.totalorder %s446_s28, %s652_s1 }
   0x6   :  { %p452_p2 = pnand %p450_p1, %p447_p0 }
   0x8   :  { %455 = shalt.err (!%p452_p2)
}
   0x9   :  { %s456_s10 = scalar_lea.vmem %s32_s25, 512  ;;  %p461_p4 = scmp.lt.s32.totalorder %s32_s25, %s32_s25 }
   0xa   :  { %p457_p3 = scmp.ne.s32.totalorder %s32_s25, %s456_s10  ;;  %p462_p5 = scmp.lt.s32.totalorder %s456_s10, %s456_s10 }
   0xc   :  { %p463_p6 = por %p462_p5, %p461_p4 }
   0xe   :  { %p464_p7 = pnand %p463_p6, %p457_p3 }
  0x10   :  { %467 = shalt.err (!%p464_p7)
}
  0x11   :  { %s541_s11 = smov 128   ;;  %s542_s12 = smov 8  }
  0x12   :  { %37 = dma.hbm_to_vmem [thread:$0]  %s652_s1, 512, %s32_s25, [#allocation7], %s541_s11, %s541_s11, %s542_s12  }
  0x13   :  { %s543_s15 = smov [#allocation3]   ;;  %s544_s17 = smov [#allocation8]  }
  0x14   :  { %s22_s16 = sshll.u32 %s543_s15, 4  ;;  %s45_s18 = sshll.u32 %s544_s17, 4  ;;  %s23_s16 = int_to_ptr.vmem [resolvable:$true] %s22_s16  ;;  %s46_s18 = int_to_ptr.vmem [resolvable:$true] %s45_s18 }
  0x15   :  { %s468_s21 = scalar_lea.hbm %s651_s0, 128 }
  0x16   :  { %p469_p8 = scmp.ne.s32.totalorder %s651_s0, %s468_s21  ;;  %p472_p9 = scmp.lt.u32.totalorder %s468_s21, %s651_s0 }
  0x18   :  { %p474_p10 = pnand %p472_p9, %p469_p8 }
  0x1a   :  { %477 = shalt.err (!%p474_p10)
}
  0x1b   :  { %s478_s1 = scalar_lea.vmem %s23_s16, 128  ;;  %p483_p12 = scmp.lt.s32.totalorder %s23_s16, %s23_s16 }
  0x1c   :  { %p479_p11 = scmp.ne.s32.totalorder %s23_s16, %s478_s1  ;;  %p484_p13 = scmp.lt.s32.totalorder %s478_s1, %s478_s1 }
  0x1e   :  { %p485_p0 = por %p484_p13, %p483_p12 }
  0x20   :  { %p486_p1 = pnand %p485_p0, %p479_p11 }
  0x22   :  { %489 = shalt.err (!%p486_p1)
}
  0x23   :  { %25 = dma.hbm_to_vmem [thread:$0]  %s651_s0, 128, %s23_s16, [#allocation4]  }
  0x24   :  { %s490_s30 = scalar_lea.hbm %s654_s3, 4096 }
  0x25   :  { %p491_p2 = scmp.ne.s32.totalorder %s654_s3, %s490_s30  ;;  %p494_p3 = scmp.lt.u32.totalorder %s490_s30, %s654_s3 }
  0x27   :  { %p496_p4 = pnand %p494_p3, %p491_p2 }
  0x29   :  { %499 = shalt.err (!%p496_p4)
}
  0x2a   :  { %s500_s12 = scalar_lea.vmem %s46_s18, 4096  ;;  %p505_p6 = scmp.lt.s32.totalorder %s46_s18, %s46_s18 }
  0x2b   :  { %p501_p5 = scmp.ne.s32.totalorder %s46_s18, %s500_s12  ;;  %p506_p7 = scmp.lt.s32.totalorder %s500_s12, %s500_s12 }
  0x2d   :  { %p507_p8 = por %p506_p7, %p505_p6 }
  0x2f   :  { %p508_p9 = pnand %p507_p8, %p501_p5 }
  0x31   :  { %511 = shalt.err (!%p508_p9)
}
  0x32   :  { %s545_s0 = smov 256   ;;  %s546_s13 = smov 16  }
  0x33   :  { %51 = dma.hbm_to_vmem [thread:$0]  %s654_s3, 4096, %s46_s18, [#allocation7], %s545_s0, %s545_s0, %s546_s13  }
  0x34   :  { %534 = dma.done.wait [#allocation4], 128  }
  0x35   :  { %535 = vsyncadd [#allocation4], 4294967168 }
  0x36   :  { %536 = dma.done.wait [#allocation7], 4608  }
  0x37   :  { %537 = vsyncadd [#allocation7], 4294962688  ;;  %v547_v0 = vmov 0.0|0.0   ;;  %vm548_vm0 = vmmov 0   ;;  %v549_v1 = vmov 0.0   ;;  %v67_v2 = vld [vmem:[#allocation6] sm:$0xff]  ;;  %v190_v62 = vlaneseq }
  0x38   :  { %391 = vmatprep.subr.bf16.mxu0 %v547_v0  ;;  %388 = vmatprep.mubr.msk.f32.mxu0 %vm548_vm0, %v549_v1  ;;  %v68_v3 = vld [vmem:[#allocation6 + $0x8] sm:$0xff]  ;;  %v69_v4 = vld [vmem:[#allocation6 + $0x10] sm:$0xff]  ;;  %v70_v6 = vld [vmem:[#allocation6 + $0x18] sm:$0xff]  ;;  %vm114_vm1 = vcmask 261120   ;;  %s550_s21 = smov [#allocation9]   ;;  %vm355_vm2 = vcmask 57344  }
  0x39   :  { %264 = vmatprep.mubr.f32.mxu1 %v549_v1  ;;  %v392_v5 = vpack.c.bf16 %v68_v3, %v67_v2  ;;  %v72_v7 = vld [vmem:[#allocation8 + $0x8] sm:$0xff]  ;;  %v74_v8 = vld [vmem:[#allocation8 + $0x18] sm:$0xff]  ;;  %v71_v9 = vld [vmem:[#allocation8] sm:$0xff]  ;;  %v395_v11 = vpack.c.bf16 %v70_v6, %v69_v4  ;;  %v191_v63 = vshrl.u32 %v190_v62, 7 }
  0x3a   :  { %v73_v10 = vld [vmem:[#allocation8 + $0x10] sm:$0xff]  ;;  %v397_v12 = vpack.c.bf16 %v74_v8, %v72_v7  ;;  %v76_v14 = vld [vmem:[#allocation8 + $0x28] sm:$0xff]  ;;  %v78_v15 = vld [vmem:[#allocation8 + $0x38] sm:$0xff] }
  0x3b   :  { %393 = vmatpush3.bf16.msra.mxu0 %v392_v5  ;;  %v399_v13 = vpack.c.bf16 %v73_v10, %v71_v9  ;;  %v75_v16 = vld [vmem:[#allocation8 + $0x20] sm:$0xff]  ;;  %v401_v17 = vpack.c.bf16 %v78_v15, %v76_v14  ;;  %v77_v18 = vld [vmem:[#allocation8 + $0x30] sm:$0xff]  ;;  %v80_v19 = vld [vmem:[#allocation8 + $0x48] sm:$0xff]  ;;  %v192_v3 = vsub.s32 0, %v191_v63  ;;  %v273_v14 = vstv %s657_s6 }
  0x3c   :  { %394 = vmatprep.subr.bf16.mxu0 %v547_v0  ;;  %v82_v20 = vld [vmem:[#allocation8 + $0x58] sm:$0xff]  ;;  %398 = vmatprep.subr.bf16.mxu1 %v397_v12  ;;  %v403_v21 = vpack.c.bf16 %v77_v18, %v75_v16  ;;  %v79_v24 = vld [vmem:[#allocation8 + $0x40] sm:$0xff]  ;;  %v81_v25 = vld [vmem:[#allocation8 + $0x50] sm:$0xff]  ;;  %v196_v0 = vsub.s32 1, %v191_v63 }
  0x3d   :  { %400 = vmatpush1.bf16.msra.mxu1 %v399_v13  ;;  %v107_v22 = vld [vmem:[#allocation3] sm:$0xff]  ;;  %v405_v23 = vpack.c.bf16 %v82_v20, %v80_v19  ;;  %v84_v26 = vld [vmem:[#allocation8 + $0x68] sm:$0xff]  ;;  %v407_v28 = vpack.c.bf16 %v81_v25, %v79_v24  ;;  %v83_v30 = vld [vmem:[#allocation8 + $0x60] sm:$0xff] }
  0x3e   :  { %402 = vmatprep.subr.bf16.mxu1 %v401_v17  ;;  %v86_v27 = vld [vmem:[#allocation8 + $0x78] sm:$0xff]  ;;  %v85_v31 = vld [vmem:[#allocation8 + $0x70] sm:$0xff]  ;;  %v88_v32 = vld [vmem:[#allocation8 + $0x88] sm:$0xff] }
  0x3f   :  { %396 = vmatpush3.bf16.msra.mxu0 %v395_v11  ;;  %v409_v29 = vpack.c.bf16 %v86_v27, %v84_v26  ;;  %v90_v33 = vld [vmem:[#allocation8 + $0x98] sm:$0xff]  ;;  %v411_v34 = vpack.c.bf16 %v85_v31, %v83_v30  ;;  %v87_v36 = vld [vmem:[#allocation8 + $0x80] sm:$0xff]  ;;  %v89_v37 = vld [vmem:[#allocation8 + $0x90] sm:$0xff] }
  0x40   :  { %v413_v35 = vpack.c.bf16 %v90_v33, %v88_v32  ;;  %v415_v38 = vpack.c.bf16 %v89_v37, %v87_v36  ;;  %v92_v39 = vld [vmem:[#allocation8 + $0xa8] sm:$0xff]  ;;  %v94_v40 = vld [vmem:[#allocation8 + $0xb8] sm:$0xff]  ;;  %v91_v42 = vld [vmem:[#allocation8 + $0xa0] sm:$0xff] }
  0x41   :  { %404 = vmatpush1.bf16.msra.mxu1 %v403_v21  ;;  %v417_v41 = vpack.c.bf16 %v94_v40, %v92_v39  ;;  %v93_v43 = vld [vmem:[#allocation8 + $0xb0] sm:$0xff]  ;;  %v96_v45 = vld [vmem:[#allocation8 + $0xc8] sm:$0xff]  ;;  %v98_v46 = vld [vmem:[#allocation8 + $0xd8] sm:$0xff] }
  0x42   :  { %389 = vmatmul.mubr.msk.f32.vlgmr.msra.gmra.mrb[0].mxu0 %vm114_vm1, %v107_v22  ;;  %406 = vmatprep.subr.bf16.mxu1 %v405_v23  ;;  %v419_v44 = vpack.c.bf16 %v93_v43, %v91_v42  ;;  %v95_v47 = vld [vmem:[#allocation8 + $0xc0] sm:$0xff]  ;;  %v421_v48 = vpack.c.bf16 %v98_v46, %v96_v45  ;;  %v97_v49 = vld [vmem:[#allocation8 + $0xd0] sm:$0xff]  ;;  %v100_v50 = vld [vmem:[#allocation8 + $0xe8] sm:$0xff] }
  0x43   :  { %v102_v51 = vld [vmem:[#allocation8 + $0xf8] sm:$0xff]  ;;  %v423_v52 = vpack.c.bf16 %v97_v49, %v95_v47  ;;  %v99_v54 = vld [vmem:[#allocation8 + $0xe0] sm:$0xff]  ;;  %v101_v55 = vld [vmem:[#allocation8 + $0xf0] sm:$0xff] }
  0x44   :  { %v425_v53 = vpack.c.bf16 %v102_v51, %v100_v50  ;;  %v427_v56 = vpack.c.bf16 %v101_v55, %v99_v54  ;;  %v373_v57 = vld [vmem:[%s653_s2] ss:$0 sm:$0xff] }
  0x45   :  { %408 = vmatpush1.bf16.msra.mxu1 %v407_v28  ;;  %v103_v1 = vld [vmem:[%s656_s5] sm:$0x3] }
  0x46   :  { %410 = vmatprep.subr.bf16.mxu1 %v409_v29  ;;  %v282_v2 = vrot.slane %v103_v1, %v196_v0  ;;  %v105_v4 = vld [vmem:[%s655_s4] sm:$0x3]  ;;  %v278_v13 = vrot.slane %v103_v1, %v192_v3  ;;  %s363_s4 = sshll.u32 %s550_s21, 4  ;;  %s364_s4 = int_to_ptr.vmem [resolvable:$true] %s363_s4 }
  0x47   :  { %v193_v5 = vrot.slane %v105_v4, %v192_v3  ;;  %v197_v6 = vrot.slane %v105_v4, %v196_v0  ;;  %s512_s22 = scalar_lea.vmem %s364_s4, 16  ;;  %s516_s23 = scalar_lea.vmem %s364_s4, 32 }
  0x48   :  { %349 = vmatprep.mubr.f32.mxu0 %v282_v2  ;;  %p513_p10 = scmp.ne.s32.totalorder %s364_s4, %s512_s22  ;;  %p517_p11 = scmp.lt.s32.totalorder %s364_s4, %s364_s4 }
  0x49   :  { %412 = vmatpush1.bf16.msra.mxu1 %v411_v34  ;;  %p518_p12 = scmp.lt.s32.totalorder %s516_s23, %s512_s22 }
  0x4a   :  { %414 = vmatprep.subr.bf16.mxu1 %v413_v35 }
  0x4b   :  { %p519_p13 = por %p518_p12, %p517_p11 }
  0x4d   :  { %416 = vmatpush1.bf16.msra.mxu1 %v415_v38  ;;  %p520_p0 = pnand %p519_p13, %p513_p10 }
  0x4e   :  { %418 = vmatprep.subr.bf16.mxu1 %v417_v41 }
  0x51   :  { %420 = vmatpush1.bf16.msra.mxu1 %v419_v44 }
  0x52   :  { %422 = vmatprep.subr.bf16.mxu1 %v421_v48 }
  0x55   :  { %424 = vmatpush1.bf16.msra.mxu1 %v423_v52 }
  0x56   :  { %426 = vmatprep.subr.bf16.mxu1 %v425_v53 }
  0x59   :  { %428 = vmatpush1.bf16.msra.mxu1 %v427_v56 }
 0x115   :  { %v184_v58 = vpop.f32.mrb[0].mxu0 }
 0x116   :  { %v185_v59 = vadd.f32 %v373_v57, %v184_v58  ;;  %v390_v60 = vpop.f32.mrb[1].mxu0 }
 0x118   :  { %440 = vtanh.f32 %v185_v59 }
 0x122   :  { %v441_v61 = vpop.eup %440 }
 0x123   :  { %265 = vmatmul.mubr.f32.vlgmr.msra.gmra.mrb[0].mxu1 %v441_v61 }
 0x1f6   :  { %v266_v7 = vpop.f32.mrb[0].mxu1 }
 0x1f7   :  { %v267_v8 = vadd.f32 %v266_v7, %v193_v5  ;;  %v268_v9 = vpop.f32.mrb[1].mxu1 }
 0x1f8   :  { %v269_v10 = vadd.f32 %v268_v9, %v197_v6 }
 0x1fa   :  { %442 = vtanh.f32 %v269_v10 }
 0x1fb   :  { %444 = vtanh.f32 %v267_v8 }
 0x204   :  { %v443_v11 = vpop.eup %442 }
 0x205   :  { %v445_v12 = vpop.eup %444  ;;  %285 = vmatprep.subr.mxu0 %v443_v11 }
 0x206   :  { %286 = vmatpush1.xpose.msra.mxu0 %v445_v12 }
 0x209   :  { %350 = vmatmul.mubr.f32.vlgmr.msra.gmra.mrb[2].mxu0 %v278_v13 }
 0x2dc   :  { %v351_v15 = vpop.f32.mrb[2].mxu0 }
 0x2dd   :  { %v352_v16 = vadd.f32 %v351_v15, %v273_v14  ;;  %v353_v17 = vpop.f32.mrb[3].mxu0 }
 0x2df   :  { %356 = vst.msk [vmem:[#allocation9] sm:$0x1] %vm355_vm2, %v352_v16 }
 0x2e0   :  { %523 = shalt.err (!%p520_p0)
}
 0x2e1   :  { %s524_s6 = scalar_lea.hbm %s658_s7, 16 }
 0x2e2   :  { %p525_p1 = scmp.ne.s32.totalorder %s658_s7, %s524_s6  ;;  %p528_p2 = scmp.lt.u32.totalorder %s524_s6, %s658_s7 }
 0x2e4   :  { %p530_p3 = pnand %p528_p2, %p525_p1 }
 0x2e6   :  { %533 = shalt.err (!%p530_p3)
}
 0x2e7   :  { %366 = dma.vmem_to_hbm [thread:$0]  %s364_s4, 16, %s658_s7, [#allocation5]  }
 0x2e8   :  { %538 = dma.done.wait [#allocation5], 16  }
 0x2e9   :  { %539 = vsyncadd [#allocation5], 4294967280 }
 0x2ea   :  { %370 = vsyncpa [#allocation4], 1 }
 0x2eb   :  { %371 = vsyncpa [#allocation7], 1 }
 0x2ec   :  { %372 = vsyncpa [#allocation5], 1 }

</bundles_post_ra>
